<compile_context>
chip_gen: v7x
topology: tpu7x:2x2x1
jax: 0.10.0
libtpu: 0.0.40
codegen_flags: <defaults>
</compile_context>

<pallas_src>
import functools

import jax
import jax.numpy as jnp
from jax import lax
from jax.experimental import pallas as pl
from jax.experimental.pallas import tpu as pltpu

BN_EPS = 1e-5
LANES = 128


def _round_up(n, m):
    return (n + m - 1) // m * m


def _pack_rows(arrays):
    """Pack 2-D f32 arrays into one lane-dense (R, 128) slab.

    Each array is zero-padded to 128 lanes and starts at a row offset that is a
    multiple of 8 (sublane alignment).  Returns (slab, row_offsets).
    """
    blocks, offsets, row = [], [], 0
    for a in arrays:
        r, c = a.shape
        assert c <= LANES
        rp = _round_up(r, 8)
        blocks.append(jnp.pad(a.astype(jnp.float32), ((0, rp - r), (0, LANES - c))))
        offsets.append(row)
        row += rp
    return jnp.concatenate(blocks, axis=0), tuple(offsets)


# ---------------------------------------------------------------------------
# Kernels
# ---------------------------------------------------------------------------
def _context_trunk(x, ctx_ref, *, D, CH, CVS, ctx_off):
    """context_net with BN folded in, followed by the batch mean.  Returns (1, CVS)."""
    o_w1, o_w2, o_w3, o_cb = ctx_off

    w1 = ctx_ref[o_w1:o_w1 + D, :CH]
    b1 = ctx_ref[o_cb:o_cb + 1, :CH]
    h = jnp.maximum(jnp.dot(x, w1, preferred_element_type=jnp.float32) + b1, 0.0)

    w2 = ctx_ref[o_w2:o_w2 + CH, :CH]
    b2 = ctx_ref[o_cb + 1:o_cb + 2, :CH]
    h = jnp.maximum(jnp.dot(h, w2, preferred_element_type=jnp.float32) + b2, 0.0)

    w3 = ctx_ref[o_w3:o_w3 + CH, :CVS]
    b3 = ctx_ref[o_cb + 2:o_cb + 3, :CVS]
    cv = jnp.dot(h, w3, preferred_element_type=jnp.float32) + b3        # (B, CVS)

    return jnp.mean(cv, axis=0, keepdims=True)                          # (1, CVS)


def _full_kernel(x_ref, ctx_ref, head_ref, out_ref, *,
                 D, CH, CVS, H, ctx_off, head_off):
    x = x_ref[...]                                                      # (B, D)
    B = x.shape[0]

    avg = _context_trunk(x, ctx_ref, D=D, CH=CH, CVS=CVS, ctx_off=ctx_off)

    o_f1c, o_f1x, o_f2, o_hv = head_off

    # fc1(cat(avg, x)) = avg @ W_ctx + x @ W_x + b ; context part is a single-row
    # dot whose (1, H) result is broadcast-added like a bias.
    wc = head_ref[o_f1c:o_f1c + CVS, :H]
    wx = head_ref[o_f1x:o_f1x + D, :H]
    bf1 = head_ref[o_hv:o_hv + 1, :H]
    ctx_row = jnp.dot(avg, wc, preferred_element_type=jnp.float32)      # (1, H)
    p = jnp.maximum(
        jnp.dot(x, wx, preferred_element_type=jnp.float32) + ctx_row + bf1, 0.0)
    # TODO(synk): nn.Dropout is identity in eval mode; training-mode dropout masks omitted.

    w2 = head_ref[o_f2:o_f2 + H, :H]
    bf2 = head_ref[o_hv + 1:o_hv + 2, :H]
    p = jnp.maximum(jnp.dot(p, w2, preferred_element_type=jnp.float32) + bf2, 0.0)

    # fc3 (H -> 1): N=1 matmul done on the VPU/XLU (multiply + lane reduce)
    # instead of wasting an MXU push.
    wf3 = head_ref[o_hv + 2:o_hv + 3, :H]                               # (1, H)
    bf3 = head_ref[o_hv + 3:o_hv + 4, 0:1]                              # (1, 1)
    pred = jnp.sum(p * wf3, axis=-1, keepdims=True) + bf3               # (B, 1)

    # Single lane-dense (B, 128) store: col 0 = prediction, cols 1..CVS = avg.
    out_ref[...] = jnp.concatenate(
        [pred,
         jnp.broadcast_to(avg, (B, CVS)),
         jnp.zeros((B, LANES - 1 - CVS), jnp.float32)],
        axis=1)


def _ctx_only_kernel(x_ref, ctx_ref, out_ref, *, D, CH, CVS, ctx_off):
    avg = _context_trunk(x_ref[...], ctx_ref, D=D, CH=CH, CVS=CVS, ctx_off=ctx_off)
    rows = out_ref.shape[0]
    out_ref[...] = jnp.concatenate(
        [jnp.broadcast_to(avg, (rows, CVS)),
         jnp.zeros((rows, LANES - CVS), jnp.float32)],
        axis=1)


# ---------------------------------------------------------------------------
# Parameter init / folding / packing (wrapper-side, done once per parameter set)
# ---------------------------------------------------------------------------
def init_params(key, input_size, context_vector_size, context_hidden_size, nn_hidden_size):
    """Deterministic raw-parameter init.  Linear weights stored as [in, out]."""
    ks = jax.random.split(key, 12)

    def lin(k, fan_in, fan_out):
        bound = 1.0 / jnp.sqrt(fan_in)
        kw, kb = jax.random.split(k)
        w = jax.random.uniform(kw, (fan_in, fan_out), jnp.float32, -bound, bound)
        b = jax.random.uniform(kb, (1, fan_out), jnp.float32, -bound, bound)
        return w, b

    def bn(n):
        # PyTorch defaults: gamma=1, beta=0, running_mean=0, running_var=1.
        return (jnp.ones((1, n), jnp.float32), jnp.zeros((1, n), jnp.float32),
                jnp.zeros((1, n), jnp.float32), jnp.ones((1, n), jnp.float32))

    p = {}
    p["w1"], p["b1"] = lin(ks[0], input_size, context_hidden_size)
    p["g1"], p["be1"], p["rm1"], p["rv1"] = bn(context_hidden_size)
    p["w2"], p["b2"] = lin(ks[1], context_hidden_size, context_hidden_size)
    p["g2"], p["be2"], p["rm2"], p["rv2"] = bn(context_hidden_size)
    p["w3"], p["b3"] = lin(ks[2], context_hidden_size, context_vector_size)

    # fc1 acts on cat([context_vector, x]) => split its weight rows.
    wf1, p["bf1"] = lin(ks[3], context_vector_size + input_size, nn_hidden_size)
    p["wf1c"] = wf1[:context_vector_size, :]
    p["wf1x"] = wf1[context_vector_size:, :]
    p["wf2"], p["bf2"] = lin(ks[4], nn_hidden_size, nn_hidden_size)
    p["wf3"], p["bf3"] = lin(ks[5], nn_hidden_size, 1)
    return p


def fold_and_pack_params(p):
    """Fold eval-mode BatchNorm into the linears and pack into two lane-dense slabs."""
    D, CH = p["w1"].shape
    CVS = p["w3"].shape[1]
    H = p["wf2"].shape[0]

    # BN(x@W + b) == x@(W*scale) + (b - rm)*scale + beta,  scale = g*rsqrt(rv+eps)
    s1 = p["g1"] * lax.rsqrt(p["rv1"] + BN_EPS)
    w1f = p["w1"] * s1
    b1f = (p["b1"] - p["rm1"]) * s1 + p["be1"]
    s2 = p["g2"] * lax.rsqrt(p["rv2"] + BN_EPS)
    w2f = p["w2"] * s2
    b2f = (p["b2"] - p["rm2"]) * s2 + p["be2"]

    ctx_bias = jnp.zeros((3, LANES), jnp.float32)
    ctx_bias = ctx_bias.at[0, :CH].set(b1f[0])
    ctx_bias = ctx_bias.at[1, :CH].set(b2f[0])
    ctx_bias = ctx_bias.at[2, :CVS].set(p["b3"][0])
    ctx_slab, ctx_off = _pack_rows([w1f, w2f, p["w3"], ctx_bias])

    head_vec = jnp.zeros((4, LANES), jnp.float32)
    head_vec = head_vec.at[0, :H].set(p["bf1"][0])
    head_vec = head_vec.at[1, :H].set(p["bf2"][0])
    head_vec = head_vec.at[2, :H].set(p["wf3"][:, 0])   # fc3 weight as a row
    head_vec = head_vec.at[3, 0].set(p["bf3"][0, 0])
    head_slab, head_off = _pack_rows([p["wf1c"], p["wf1x"], p["wf2"], head_vec])

    return dict(ctx_slab=ctx_slab, ctx_off=ctx_off,
                head_slab=head_slab, head_off=head_off,
                D=D, CH=CH, CVS=CVS, H=H)


# ---------------------------------------------------------------------------
# Forward wrapper
# ---------------------------------------------------------------------------
def nn_context_forward(packed, x, context_only=False):
    D, CH, CVS, H = packed["D"], packed["CH"], packed["CVS"], packed["H"]
    B = x.shape[0]
    vmem = pl.BlockSpec(memory_space=pltpu.MemorySpace.VMEM)

    if context_only:
        # Cheap path: only the context-net slab is DMA'd, head compute skipped.
        kern = functools.partial(_ctx_only_kernel, D=D, CH=CH, CVS=CVS,
                                 ctx_off=packed["ctx_off"])
        out = pl.pallas_call(
            kern,
            out_shape=jax.ShapeDtypeStruct((8, LANES), jnp.float32),
            in_specs=[vmem, vmem],
            out_specs=vmem,
        )(x, packed["ctx_slab"])
        return out[0, :CVS]

    kern = functools.partial(_full_kernel, D=D, CH=CH, CVS=CVS, H=H,
                             ctx_off=packed["ctx_off"], head_off=packed["head_off"])
    out = pl.pallas_call(
        kern,
        out_shape=jax.ShapeDtypeStruct((B, LANES), jnp.float32),
        in_specs=[vmem, vmem, vmem],
        out_specs=vmem,
    )(x, packed["ctx_slab"], packed["head_slab"])
    return out[:, 0:1]                                   # prediction, (B, 1)


# ---------------------------------------------------------------------------
# Self-test
# ---------------------------------------------------------------------------
if __name__ == "__main__":
    input_size = 16
    context_vector_size = 8
    context_hidden_size = 32
    nn_hidden_size = 32
    batch = 8

    key = jax.random.PRNGKey(0)
    kx, kp = jax.random.split(key)
    x = jax.random.normal(kx, (batch, input_size), jnp.float32)
    params = init_params(kp, input_size, context_vector_size,
                         context_hidden_size, nn_hidden_size)
    packed = fold_and_pack_params(params)

    pred = jax.block_until_ready(nn_context_forward(packed, x, context_only=False))
    avg_ctx = jax.block_until_ready(nn_context_forward(packed, x, context_only=True))

    assert pred.shape == (batch, 1)
    assert avg_ctx.shape == (context_vector_size,)

    # Pure-JAX reference (raw, un-folded parameters).
    def ref(p, x):
        def bn(h, g, be, rm, rv):
            return g * (h - rm) / jnp.sqrt(rv + BN_EPS) + be
        h = jnp.maximum(bn(x @ p["w1"] + p["b1"], p["g1"], p["be1"], p["rm1"], p["rv1"]), 0.0)
        h = jnp.maximum(bn(h @ p["w2"] + p["b2"], p["g2"], p["be2"], p["rm2"], p["rv2"]), 0.0)
        cv = h @ p["w3"] + p["b3"]
        avg = jnp.mean(cv, axis=0)
        pv = jnp.concatenate([jnp.broadcast_to(avg, (x.shape[0], avg.shape[0])), x], axis=1)
        wf1 = jnp.concatenate([p["wf1c"], p["wf1x"]], axis=0)
        q = jnp.maximum(pv @ wf1 + p["bf1"], 0.0)
        q = jnp.maximum(q @ p["wf2"] + p["bf2"], 0.0)
        return avg, q @ p["wf3"] + p["bf3"]

    avg_ref, pred_ref = ref(params, x)
    assert jnp.allclose(avg_ctx, avg_ref, atol=1e-4, rtol=1e-4)
    assert jnp.allclose(pred, pred_ref, atol=1e-4, rtol=1e-4)

    print("KERNEL_OK")
</pallas_src>

<mosaic_0001>
module attributes {stable_mosaic.version = 11 : i64} {
  func.func @_full_kernel(%arg0: memref<8x16xf32, #tpu.memory_space<vmem>>, %arg1: memref<88x128xf32, #tpu.memory_space<vmem>>, %arg2: memref<64x128xf32, #tpu.memory_space<vmem>>, %arg3: memref<8x128xf32, #tpu.memory_space<vmem>>) attributes {dimension_semantics = [], scalar_prefetch = 0 : i64, scratch_operands = 0 : i64, tpu.core_type = #tpu.core_type<tc>} {
    %c0 = arith.constant 0 : index
    %c0_0 = arith.constant 0 : index
    %0 = vector.load %arg0[%c0, %c0_0] : memref<8x16xf32, #tpu.memory_space<vmem>>, vector<8x16xf32>
    %c0_1 = arith.constant 0 : index
    %c0_2 = arith.constant 0 : index
    %1 = vector.load %arg1[%c0_1, %c0_2] : memref<88x128xf32, #tpu.memory_space<vmem>>, vector<16x32xf32>
    %c80 = arith.constant 80 : index
    %c0_3 = arith.constant 0 : index
    %2 = vector.load %arg1[%c80, %c0_3] : memref<88x128xf32, #tpu.memory_space<vmem>>, vector<1x32xf32>
    %cst = arith.constant dense<0.000000e+00> : vector<8x32xf32>
    %3 = tpu.matmul %0, %1, %cst {dimension_numbers = #tpu.dot_dimension_numbers<[1], [0], [0], [1], [0, 0, 1, 1], [], []>} : vector<8x16xf32>, vector<16x32xf32>, vector<8x32xf32> -> vector<8x32xf32>
    %4 = vector.broadcast %2 : vector<1x32xf32> to vector<8x32xf32>
    %5 = arith.addf %3, %4 : vector<8x32xf32>
    %cst_4 = arith.constant 0.000000e+00 : f32
    %6 = vector.broadcast %cst_4 : f32 to vector<8x32xf32>
    %7 = arith.maximumf %5, %6 : vector<8x32xf32>
    %c16 = arith.constant 16 : index
    %c0_5 = arith.constant 0 : index
    %8 = vector.load %arg1[%c16, %c0_5] : memref<88x128xf32, #tpu.memory_space<vmem>>, vector<32x32xf32>
    %c81 = arith.constant 81 : index
    %c0_6 = arith.constant 0 : index
    %9 = vector.load %arg1[%c81, %c0_6] : memref<88x128xf32, #tpu.memory_space<vmem>>, vector<1x32xf32>
    %cst_7 = arith.constant dense<0.000000e+00> : vector<8x32xf32>
    %10 = tpu.matmul %7, %8, %cst_7 {dimension_numbers = #tpu.dot_dimension_numbers<[1], [0], [0], [1], [0, 0, 1, 1], [], []>} : vector<8x32xf32>, vector<32x32xf32>, vector<8x32xf32> -> vector<8x32xf32>
    %11 = vector.broadcast %9 : vector<1x32xf32> to vector<8x32xf32>
    %12 = arith.addf %10, %11 : vector<8x32xf32>
    %cst_8 = arith.constant 0.000000e+00 : f32
    %13 = vector.broadcast %cst_8 : f32 to vector<8x32xf32>
    %14 = arith.maximumf %12, %13 : vector<8x32xf32>
    %c48 = arith.constant 48 : index
    %c0_9 = arith.constant 0 : index
    %15 = vector.load %arg1[%c48, %c0_9] : memref<88x128xf32, #tpu.memory_space<vmem>>, vector<32x8xf32>
    %c82 = arith.constant 82 : index
    %c0_10 = arith.constant 0 : index
    %16 = vector.load %arg1[%c82, %c0_10] : memref<88x128xf32, #tpu.memory_space<vmem>>, vector<1x8xf32>
    %cst_11 = arith.constant dense<0.000000e+00> : vector<8x8xf32>
    %17 = tpu.matmul %14, %15, %cst_11 {dimension_numbers = #tpu.dot_dimension_numbers<[1], [0], [0], [1], [0, 0, 1, 1], [], []>} : vector<8x32xf32>, vector<32x8xf32>, vector<8x8xf32> -> vector<8x8xf32>
    %18 = vector.broadcast %16 : vector<1x8xf32> to vector<8x8xf32>
    %19 = arith.addf %17, %18 : vector<8x8xf32>
    %cst_12 = arith.constant dense<0.000000e+00> : vector<8xf32>
    %20 = vector.multi_reduction <add>, %19, %cst_12 [0] : vector<8x8xf32> to vector<8xf32>
    %21 = vector.shape_cast %20 : vector<8xf32> to vector<1x8xf32>
    %cst_13 = arith.constant 8.000000e+00 : f32
    %22 = vector.broadcast %cst_13 : f32 to vector<1x8xf32>
    %23 = arith.divf %21, %22 : vector<1x8xf32>
    %c0_14 = arith.constant 0 : index
    %c0_15 = arith.constant 0 : index
    %24 = vector.load %arg2[%c0_14, %c0_15] : memref<64x128xf32, #tpu.memory_space<vmem>>, vector<8x32xf32>
    %c8 = arith.constant 8 : index
    %c0_16 = arith.constant 0 : index
    %25 = vector.load %arg2[%c8, %c0_16] : memref<64x128xf32, #tpu.memory_space<vmem>>, vector<16x32xf32>
    %c56 = arith.constant 56 : index
    %c0_17 = arith.constant 0 : index
    %26 = vector.load %arg2[%c56, %c0_17] : memref<64x128xf32, #tpu.memory_space<vmem>>, vector<1x32xf32>
    %cst_18 = arith.constant dense<0.000000e+00> : vector<1x32xf32>
    %27 = tpu.matmul %23, %24, %cst_18 {dimension_numbers = #tpu.dot_dimension_numbers<[1], [0], [0], [1], [0, 0, 1, 1], [], []>} : vector<1x8xf32>, vector<8x32xf32>, vector<1x32xf32> -> vector<1x32xf32>
    %cst_19 = arith.constant dense<0.000000e+00> : vector<8x32xf32>
    %28 = tpu.matmul %0, %25, %cst_19 {dimension_numbers = #tpu.dot_dimension_numbers<[1], [0], [0], [1], [0, 0, 1, 1], [], []>} : vector<8x16xf32>, vector<16x32xf32>, vector<8x32xf32> -> vector<8x32xf32>
    %29 = vector.broadcast %27 : vector<1x32xf32> to vector<8x32xf32>
    %30 = arith.addf %28, %29 : vector<8x32xf32>
    %31 = vector.broadcast %26 : vector<1x32xf32> to vector<8x32xf32>
    %32 = arith.addf %30, %31 : vector<8x32xf32>
    %cst_20 = arith.constant 0.000000e+00 : f32
    %33 = vector.broadcast %cst_20 : f32 to vector<8x32xf32>
    %34 = arith.maximumf %32, %33 : vector<8x32xf32>
    %c24 = arith.constant 24 : index
    %c0_21 = arith.constant 0 : index
    %35 = vector.load %arg2[%c24, %c0_21] : memref<64x128xf32, #tpu.memory_space<vmem>>, vector<32x32xf32>
    %c57 = arith.constant 57 : index
    %c0_22 = arith.constant 0 : index
    %36 = vector.load %arg2[%c57, %c0_22] : memref<64x128xf32, #tpu.memory_space<vmem>>, vector<1x32xf32>
    %cst_23 = arith.constant dense<0.000000e+00> : vector<8x32xf32>
    %37 = tpu.matmul %34, %35, %cst_23 {dimension_numbers = #tpu.dot_dimension_numbers<[1], [0], [0], [1], [0, 0, 1, 1], [], []>} : vector<8x32xf32>, vector<32x32xf32>, vector<8x32xf32> -> vector<8x32xf32>
    %38 = vector.broadcast %36 : vector<1x32xf32> to vector<8x32xf32>
    %39 = arith.addf %37, %38 : vector<8x32xf32>
    %cst_24 = arith.constant 0.000000e+00 : f32
    %40 = vector.broadcast %cst_24 : f32 to vector<8x32xf32>
    %41 = arith.maximumf %39, %40 : vector<8x32xf32>
    %c58 = arith.constant 58 : index
    %c0_25 = arith.constant 0 : index
    %42 = vector.load %arg2[%c58, %c0_25] : memref<64x128xf32, #tpu.memory_space<vmem>>, vector<1x32xf32>
    %c59 = arith.constant 59 : index
    %c0_26 = arith.constant 0 : index
    %43 = vector.load %arg2[%c59, %c0_26] : memref<64x128xf32, #tpu.memory_space<vmem>>, vector<1x1xf32>
    %44 = vector.broadcast %42 : vector<1x32xf32> to vector<8x32xf32>
    %45 = arith.mulf %41, %44 : vector<8x32xf32>
    %cst_27 = arith.constant dense<0.000000e+00> : vector<8xf32>
    %46 = vector.multi_reduction <add>, %45, %cst_27 [1] : vector<8x32xf32> to vector<8xf32>
    %47 = vector.shape_cast %46 : vector<8xf32> to vector<8x1xf32>
    %48 = vector.broadcast %43 : vector<1x1xf32> to vector<8x1xf32>
    %49 = arith.addf %47, %48 : vector<8x1xf32>
    %50 = vector.shape_cast %23 : vector<1x8xf32> to vector<1x8xf32>
    %51 = vector.broadcast %50 : vector<1x8xf32> to vector<8x8xf32>
    %cst_28 = arith.constant 0.000000e+00 : f32
    %52 = vector.broadcast %cst_28 : f32 to vector<8x119xf32>
    %53 = tpu.concatenate %49, %51, %52 in 1 : vector<8x1xf32>, vector<8x8xf32>, vector<8x119xf32> -> vector<8x128xf32>
    %c0_29 = arith.constant 0 : index
    %c0_30 = arith.constant 0 : index
    %54 = vector.load %arg3[%c0_29, %c0_30] : memref<8x128xf32, #tpu.memory_space<vmem>>, vector<8x128xf32>
    tpu.vector_store %arg3[%c0_29, %c0_30], %53 {strides = array<i32>} : memref<8x128xf32, #tpu.memory_space<vmem>>, vector<8x128xf32>,
    return
  }
}

</mosaic_0001>

<bundles_post_ra>
// kernel: tpu_custom_call.1
= control target key start
LH: loop header
LB: loop body
LE: loop exit
PB: predicated region body
PF: predicated region fallthrough
CT: control target
= control target key end

     0   :  { %8 = vsyncpa [#allocation3], 0  ;;  %s919_s0 = inlined_call_operand.hbm [shape: f32[8,16], index: 0, kind: input, shape index: {}]   ;;  %s920_s1 = inlined_call_operand.hbm [shape: f32[88,128], index: 1, kind: input, shape index: {}]   ;;  %s921_s2 = inlined_call_operand.hbm [shape: f32[64,128], index: 2, kind: input, shape index: {}]   ;;  %s922_s3 = inlined_call_operand.hbm [shape: f32[8,128], index: 3, kind: output, shape index: {}]  }
   0x1   :  { %9 = vsyncpa [#allocation6], 0 }
   0x2   :  { %10 = vsyncpa [#allocation4], 0  ;;  %s808_s12 = smov [#allocation5]   ;;  %s714_s16 = scalar_lea.hbm %s920_s1, 1408 }
   0x3   :  { %s26_s13 = sshll.u32 %s808_s12, 4  ;;  %p715_p0 = scmp.ne.s32.totalorder %s920_s1, %s714_s16  ;;  %s27_s13 = int_to_ptr.vmem [resolvable:$true] %s26_s13 }
   0x4   :  { %p718_p1 = scmp.lt.u32.totalorder %s714_s16, %s920_s1 }
   0x6   :  { %p720_p2 = pnand %p718_p1, %p715_p0 }
   0x8   :  { %723 = shalt.err (!%p720_p2)
}
   0x9   :  { %s724_s21 = scalar_lea.vmem %s27_s13, 1408  ;;  %p729_p4 = scmp.lt.s32.totalorder %s27_s13, %s27_s13 }
   0xa   :  { %p725_p3 = scmp.ne.s32.totalorder %s27_s13, %s724_s21  ;;  %p730_p5 = scmp.lt.s32.totalorder %s724_s21, %s724_s21 }
   0xc   :  { %p731_p6 = por %p730_p5, %p729_p4 }
   0xe   :  { %p732_p7 = pnand %p731_p6, %p725_p3 }
  0x10   :  { %735 = shalt.err (!%p732_p7)
}
  0x11   :  { %s809_s22 = smov 128   ;;  %s810_s23 = smov 8  }
  0x12   :  { %32 = dma.hbm_to_vmem [thread:$0]  %s920_s1, 1408, %s27_s13, [#allocation6], %s809_s22, %s809_s22, %s810_s23  }
  0x13   :  { %s811_s26 = smov [#allocation2]   ;;  %s812_s28 = smov [#allocation7]  }
  0x14   :  { %s17_s27 = sshll.u32 %s811_s26, 4  ;;  %s38_s29 = sshll.u32 %s812_s28, 4  ;;  %s18_s27 = int_to_ptr.vmem [resolvable:$true] %s17_s27  ;;  %s39_s29 = int_to_ptr.vmem [resolvable:$true] %s38_s29 }
  0x15   :  { %s736_s5 = scalar_lea.hbm %s919_s0, 128 }
  0x16   :  { %p737_p8 = scmp.ne.s32.totalorder %s919_s0, %s736_s5  ;;  %p740_p9 = scmp.lt.u32.totalorder %s736_s5, %s919_s0 }
  0x18   :  { %p742_p10 = pnand %p740_p9, %p737_p8 }
  0x1a   :  { %745 = shalt.err (!%p742_p10)
}
  0x1b   :  { %s746_s1 = scalar_lea.vmem %s18_s27, 128  ;;  %p751_p12 = scmp.lt.s32.totalorder %s18_s27, %s18_s27 }
  0x1c   :  { %p747_p11 = scmp.ne.s32.totalorder %s18_s27, %s746_s1  ;;  %p752_p13 = scmp.lt.s32.totalorder %s746_s1, %s746_s1 }
  0x1e   :  { %p753_p0 = por %p752_p13, %p751_p12 }
  0x20   :  { %p754_p1 = pnand %p753_p0, %p747_p11 }
  0x22   :  { %757 = shalt.err (!%p754_p1)
}
  0x23   :  { %20 = dma.hbm_to_vmem [thread:$0]  %s919_s0, 128, %s18_s27, [#allocation3]  }
  0x24   :  { %s758_s14 = scalar_lea.hbm %s921_s2, 1024 }
  0x25   :  { %p759_p2 = scmp.ne.s32.totalorder %s921_s2, %s758_s14  ;;  %p762_p3 = scmp.lt.u32.totalorder %s758_s14, %s921_s2 }
  0x27   :  { %p764_p4 = pnand %p762_p3, %p759_p2 }
  0x29   :  { %767 = shalt.err (!%p764_p4)
}
  0x2a   :  { %s768_s19 = scalar_lea.vmem %s39_s29, 1024  ;;  %p773_p6 = scmp.lt.s32.totalorder %s39_s29, %s39_s29 }
  0x2b   :  { %p769_p5 = scmp.ne.s32.totalorder %s39_s29, %s768_s19  ;;  %p774_p7 = scmp.lt.s32.totalorder %s768_s19, %s768_s19 }
  0x2d   :  { %p775_p8 = por %p774_p7, %p773_p6 }
  0x2f   :  { %p776_p9 = pnand %p775_p8, %p769_p5 }
  0x31   :  { %779 = shalt.err (!%p776_p9)
}
  0x32   :  { %44 = dma.hbm_to_vmem [thread:$0]  %s921_s2, 1024, %s39_s29, [#allocation6], %s809_s22, %s809_s22, %s810_s23  }
  0x33   :  { %802 = dma.done.wait [#allocation3], 128  }
  0x34   :  { %803 = vsyncadd [#allocation3], 4294967168 }
  0x35   :  { %804 = dma.done.wait [#allocation6], 2432  }
  0x36   :  { %805 = vsyncadd [#allocation6], 4294964864  ;;  %v813_v0 = vmov 0.0|0.0   ;;  %vm814_vm0 = vmmov 0   ;;  %v815_v1 = vmov 0.0   ;;  %v55_v2 = vld [vmem:[#allocation5] sm:$0xff]  ;;  %v390_v52 = vlaneseq }
  0x37   :  { %680 = vmatprep.subr.bf16.mxu0 %v813_v0  ;;  %632 = vmatprep.mubr.msk.f32.mxu0 %vm814_vm0, %v815_v1  ;;  %v56_v3 = vld [vmem:[#allocation5 + $0x8] sm:$0xff]  ;;  %v137_v5 = vld [vmem:[#allocation5 + $0x10] sm:$0xff]  ;;  %v138_v6 = vld [vmem:[#allocation5 + $0x18] sm:$0xff]  ;;  %vm62_vm1 = vcmask 130048   ;;  %vm146_vm2 = vcmask 261120   ;;  %vm303_vm3 = vcmask 64512  }
  0x38   :  { %683 = vmatprep.subr.bf16.mxu1 %v813_v0  ;;  %643 = vmatprep.mubr.msk.f32.mxu1 %vm814_vm0, %v815_v1  ;;  %v681_v4 = vpack.c.bf16 %v56_v3, %v55_v2  ;;  %v684_v7 = vpack.c.bf16 %v138_v6, %v137_v5  ;;  %v54_v8 = vld [vmem:[#allocation2] sm:$0xff]  ;;  %v139_v9 = vld [vmem:[#allocation5 + $0x20] sm:$0xff]  ;;  %v140_v10 = vld [vmem:[#allocation5 + $0x28] sm:$0xff]  ;;  %v391_v53 = vshrl.u32 %v390_v52, 7  ;;  %s816_s2 = smov 1   ;;  %vm571_vm4 = vcmask 7168  }
  0x39   :  { %v687_v11 = vpack.c.bf16 %v140_v10, %v139_v9  ;;  %v221_v12 = vld [vmem:[#allocation5 + $0x30] sm:$0xff]  ;;  %v222_v13 = vld [vmem:[#allocation5 + $0x38] sm:$0xff]  ;;  %v223_v20 = vld [vmem:[#allocation5 + $0x40] sm:$0xff]  ;;  %s817_s21 = smov [#allocation8]   ;;  %vm573_vm5 = vcmask 72704  }
  0x3a   :  { %682 = vmatpush3.bf16.msra.mxu0 %v681_v4  ;;  %685 = vmatpush3.bf16.msra.mxu1 %v684_v7  ;;  %v690_v14 = vpack.c.bf16 %v222_v13, %v221_v12  ;;  %v592_v15 = vld [vmem:[#allocation5 + $0x50] ss:$0 sm:$0xff]  ;;  %v224_v21 = vld [vmem:[#allocation5 + $0x48] sm:$0xff]  ;;  %v594_v23 = vld [vmem:[#allocation5 + $0x51] ss:$0 sm:$0xff]  ;;  %v392_v54 = vsub.s32 0, %v391_v53 }
  0x3b   :  { %689 = vmatprep.subr.bf16.mxu0 %v813_v0  ;;  %686 = vmatprep.subr.bf16.mxu1 %v813_v0  ;;  %v693_v22 = vpack.c.bf16 %v224_v21, %v223_v20  ;;  %v314_v28 = vld [vmem:[#allocation7 + $0x8] sm:$0xff]  ;;  %v315_v29 = vld [vmem:[#allocation7 + $0x10] sm:$0xff]  ;;  %v313_v31 = vld [vmem:[#allocation7] sm:$0xff]  ;;  %s582_s22 = sshll.u32 %s817_s21, 4  ;;  %s583_s22 = int_to_ptr.vmem [resolvable:$true] %s582_s22 }
  0x3c   :  { %v696_v30 = vpack.c.bf16 %v315_v29, %v314_v28  ;;  %v596_v32 = vld [vmem:[#allocation5 + $0x52] ss:$0 sm:$0xff]  ;;  %v471_v45 = vld [vmem:[#allocation7 + $0x20] sm:$0xff]  ;;  %v472_v49 = vld [vmem:[#allocation7 + $0x28] sm:$0xff]  ;;  %s780_s23 = scalar_lea.vmem %s583_s22, 128  ;;  %p785_p11 = scmp.lt.s32.totalorder %s583_s22, %s583_s22 }
  0x3d   :  { %633 = vmatmul.mubr.msk.f32.vlgmr.msra.gmra.mrb[0].mxu0 %vm62_vm1, %v54_v8  ;;  %v470_v44 = vld [vmem:[#allocation7 + $0x18] sm:$0xff]  ;;  %v473_v50 = vld [vmem:[#allocation7 + $0x30] sm:$0xff]  ;;  %p781_p10 = scmp.ne.s32.totalorder %s583_s22, %s780_s23  ;;  %p786_p12 = scmp.lt.s32.totalorder %s780_s23, %s780_s23 }
  0x3e   :  { %654 = vmatprep.mubr.msk.f32.mxu0 %vm814_vm0, %v815_v1  ;;  %688 = vmatpush3.bf16.msra.mxu1 %v687_v11  ;;  %v699_v46 = vpack.c.bf16 %v471_v45, %v470_v44  ;;  %v702_v51 = vpack.c.bf16 %v473_v50, %v472_v49  ;;  %v600_v58 = vld [vmem:[#allocation7 + $0x38] ss:$0 sm:$0xff]  ;;  %v601_v62 = vld [vmem:[#allocation7 + $0x39] ss:$0 sm:$0xff]  ;;  %v603_v2 = vld [vmem:[#allocation7 + $0x3a] ss:$0 sm:$0xff] }
  0x3f   :  { %657 = vmatprep.subr.mxu1 %v815_v1  ;;  %691 = vmatpush3.bf16.msra.mxu0 %v690_v14  ;;  %v604_v6 = vld [vmem:[#allocation7 + $0x3b] ss:$0 sm:$0xff]  ;;  %p787_p13 = por %p786_p12, %p785_p11 }
  0x40   :  { %692 = vmatprep.subr.bf16.mxu0 %v813_v0 }
  0x41   :  { %p788_p0 = pnand %p787_p13, %p781_p10 }
  0x43   :  { %694 = vmatpush3.bf16.msra.mxu0 %v693_v22 }
  0x44   :  { %695 = vmatprep.subr.bf16.mxu0 %v813_v0 }
 0x110   :  { %v132_v16 = vpop.f32.mrb[0].mxu0 }
 0x111   :  { %v133_v17 = vadd.f32 %v592_v15, %v132_v16  ;;  %v634_v18 = vpop.f32.mrb[1].mxu0 }
 0x113   :  { %v136_v19 = vmax.f32 %v133_v17, 0.0 }
 0x115   :  { %644 = vmatmul.mubr.msk.f32.vlgmr.msra.gmra.mrb[0].mxu1 %vm146_vm2, %v136_v19 }
 0x116   :  { %659 = vmatprep.mubr.msk.f32.mxu1 %vm814_vm0, %v815_v1  ;;  %658 = vmatpush3.msra.mxu1 %v313_v31 }
 0x117   :  { %698 = vmatprep.subr.bf16.mxu1 %v813_v0 }
 0x1e8   :  { %v216_v24 = vpop.f32.mrb[0].mxu1 }
 0x1e9   :  { %v217_v25 = vadd.f32 %v594_v23, %v216_v24  ;;  %v645_v26 = vpop.f32.mrb[1].mxu1 }
 0x1eb   :  { %v220_v27 = vmax.f32 %v217_v25, 0.0 }
 0x1ed   :  { %655 = vmatmul.mubr.msk.f32.vlgmr.msra.gmra.mrb[2].mxu0 %vm146_vm2, %v220_v27 }
 0x1ee   :  { %666 = vmatprep.mubr.msk.f32.mxu0 %vm814_vm0, %v815_v1  ;;  %697 = vmatpush3.bf16.msra.mxu0 %v696_v30 }
 0x1f1   :  { %667 = vmatmul.mubr.msk.f32.vlgmr.msra.gmra.mrb[4].mxu0 %vm62_vm1, %v54_v8 }
 0x2c0   :  { %v299_v33 = vpop.f32.mrb[2].mxu0 }
 0x2c1   :  { %v300_v34 = vadd.f32 %v596_v32, %v299_v33  ;;  %v656_v35 = vpop.f32.mrb[3].mxu0 }
 0x2c3   :  { %v304_v36 = vsel %vm303_vm3, %v300_v34, 0.0 }
 0x2c4   :  { %v305_v37 = vrot.slane %v304_v36, 4  ;;  %v460_v47 = vpop.f32.mrb[4].mxu0 }
 0x2c5   :  { %v668_v48 = vpop.f32.mrb[5].mxu0 }
 0x2c6   :  { %v306_v38 = vadd.f32 %v305_v37, %v304_v36 }
 0x2c8   :  { %v307_v39 = vrot.slane %v306_v38, 2 }
 0x2ca   :  { %v308_v40 = vadd.f32 %v307_v39, %v306_v38 }
 0x2cc   :  { %v309_v41 = vrot.slane %v308_v40, 1 }
 0x2ce   :  { %v310_v42 = vadd.f32 %v309_v41, %v308_v40 }
 0x2d0   :  { %v312_v43 = vmul.f32 0.125, %v310_v42 }
 0x2d2   :  { %660 = vmatmul.mubr.msk.f32.vlgmr.msra.gmra.mrb[2].mxu1 %vm303_vm3, %v312_v43 }
 0x2d3   :  { %677 = vmatprep.mubr.msk.f32.mxu1 %vm814_vm0, %v815_v1  ;;  %700 = vmatpush3.bf16.msra.mxu1 %v699_v46 }
 0x2d4   :  { %701 = vmatprep.subr.bf16.mxu1 %v813_v0 }
 0x2d7   :  { %703 = vmatpush3.bf16.msra.mxu1 %v702_v51 }
 0x3a5   :  { %v386_v55 = vpop.f32.mrb[2].mxu1 }
 0x3a6   :  { %v393_v56 = vrot.slane %v386_v55, %v392_v54  ;;  %v661_v57 = vpop.f32.mrb[3].mxu1 }
 0x3a8   :  { %v461_v59 = vadd.f32 %v460_v47, %v393_v56 }
 0x3aa   :  { %v468_v60 = vadd.f32 %v600_v58, %v461_v59 }
 0x3ac   :  { %v469_v61 = vmax.f32 %v468_v60, 0.0 }
 0x3ae   :  { %678 = vmatmul.mubr.msk.f32.vlgmr.msra.gmra.mrb[4].mxu1 %vm146_vm2, %v469_v61 }
 0x481   :  { %v548_v63 = vpop.f32.mrb[4].mxu1 }
 0x482   :  { %v549_v1 = vadd.f32 %v601_v62, %v548_v63  ;;  %v679_v0 = vpop.f32.mrb[5].mxu1 }
 0x484   :  { %v552_v3 = vmax.f32 %v549_v1, 0.0 }
 0x486   :  { %v559_v4 = vmul.f32 %v603_v2, %v552_v3 }
 0x488   :  { %v560_v5 = vsel %vm146_vm2, %v559_v4, 0.0 }
 0x489   :  { %561 = vadd.xlane.f32.xlu0 %v560_v5 }
 0x49f   :  { %568 = vrot.lane.b32.xlu0 %v312_v43, %s816_s2 }
 0x516   :  { %v562_v7 = vpop.xlane.xlu0 %561 }
 0x517   :  { %v567_v8 = vadd.f32 %v604_v6, %v562_v7 }
 0x51a   :  { %v569_v9 = vpop.permute.xlu0 %568 }
 0x51b   :  { %v572_v10 = vsel %vm571_vm4, %v567_v8, %v569_v9 }
 0x51c   :  { %v574_v11 = vsel %vm573_vm5, %v572_v10, 0.0 }
 0x51d   :  { %575 = vst [vmem:[#allocation8] sm:$0xff] %v574_v11 }
 0x51e   :  { %791 = shalt.err (!%p788_p0)
}
 0x51f   :  { %s792_s26 = scalar_lea.hbm %s922_s3, 128 }
 0x520   :  { %p793_p1 = scmp.ne.s32.totalorder %s922_s3, %s792_s26  ;;  %p796_p2 = scmp.lt.u32.totalorder %s792_s26, %s922_s3 }
 0x522   :  { %p798_p3 = pnand %p796_p2, %p793_p1 }
 0x524   :  { %801 = shalt.err (!%p798_p3)
}
 0x525   :  { %585 = dma.vmem_to_hbm [thread:$0]  %s583_s22, 128, %s922_s3, [#allocation4]  }
 0x526   :  { %806 = dma.done.wait [#allocation4], 128  }
 0x527   :  { %807 = vsyncadd [#allocation4], 4294967168 }
 0x528   :  { %589 = vsyncpa [#allocation3], 1 }
 0x529   :  { %590 = vsyncpa [#allocation6], 1 }
 0x52a   :  { %591 = vsyncpa [#allocation4], 1 }

</bundles_post_ra>
